<compile_context>
chip_gen: v6e
topology: v6e:2x2x1
jax: 0.10.0
libtpu: 0.0.40
codegen_flags: <defaults>
</compile_context>

<pallas_src>
import jax
import jax.numpy as jnp
from jax.experimental import pallas as pl
from jax.experimental.pallas import tpu as pltpu


# ---- packed parameter slab layout (48 rows x 128 lanes, float32) -----------
# row 0          : W1 row               lanes 0:32   (lane 32 == 0)
# row 1          : b1 row               lanes 0:32   (lane 32 == 1  -> h1[32]=1)
# rows 8:48      : combined 40-row block (8-row aligned):
#   lanes 0:33   : W2^T (out, in) rows 0:32 with b2[j] at lane 32;
#                  block row 32 = e_32 (lane 32 == 1) so h2[32] == 1;
#                  block rows 33:39 zero.
#   lanes 64:104 : W3 (in=block row, out=lane-64) rows 0:32;
#                  block row 32 = b3; block rows 33:39 zero.
_ROW_W1 = 0
_ROW_B1 = 1
_ROW_BLK = 8          # start of the combined W2^T / W3 block (8-aligned)
_BLK_ROWS = 40        # 33 meaningful rows, padded to a multiple of 8
_OUT_LANE = 64        # first valid output lane (fc3 outputs live at 64:104)
_SLAB_ROWS = 48
_SLAB_LANES = 128


def _condition_mlp_kernel(x_ref, p_ref, out_ref):
    # x_ref: (1,) scalar in SMEM; p_ref: (48, 128) packed params in VMEM.
    x0 = x_ref[0]                                           # scalar

    w1 = p_ref[_ROW_W1:_ROW_W1 + 1, :]                      # (1, 128)
    b1 = p_ref[_ROW_B1:_ROW_B1 + 1, :]                      # (1, 128)
    blk = p_ref[_ROW_BLK:_ROW_BLK + _BLK_ROWS, :]           # (40, 128)

    # fc1 (K=1): pure VPU broadcast multiply.  h1 lanes 0:32 = relu(fc1),
    # lane 32 = 1 (bias-fold "ones" lane), all other lanes stay exactly 0.
    h1 = jnp.maximum(x0 * w1 + b1, 0.0)                     # (1, 128)

    # fc2 (+b2 folded at lane 32): lane reduce (XLU) over h1 * block rows.
    # h1's zero padding lanes mask the co-located W3 values at lanes 64:104.
    h2 = jnp.maximum(jnp.sum(h1 * blk, axis=-1, keepdims=True), 0.0)   # (40, 1)
    # h2 rows 0:32 = relu(fc2); row 32 = 1 (b3 fold); rows 33:39 = 0.

    # fc3 (+b3 folded at block row 32): sublane reduce (XLU).
    # Valid outputs land in lanes 64:104; lanes 0:33 hold harmless garbage.
    z = jnp.sum(h2 * blk, axis=0, keepdims=True)            # (1, 128)

    # Numerically stable softplus; full-lane unmasked store.
    out_ref[...] = jnp.maximum(z, 0.0) + jnp.log1p(jnp.exp(-jnp.abs(z)))


def pack_params(params):
    """Pack the six Linear params into one 48x128 f32 slab (done once)."""
    w1, b1, w2, b2, w3, b3 = params   # (1,32),(1,32),(32,32),(1,32),(32,40),(1,40)
    slab = jnp.zeros((_SLAB_ROWS, _SLAB_LANES), jnp.float32)
    slab = slab.at[_ROW_W1, 0:32].set(w1.reshape(32))
    slab = slab.at[_ROW_B1, 0:32].set(b1.reshape(32))
    slab = slab.at[_ROW_B1, 32].set(1.0)                                  # ones lane
    slab = slab.at[_ROW_BLK:_ROW_BLK + 32, 0:32].set(w2.T)                # W2^T (out,in)
    slab = slab.at[_ROW_BLK:_ROW_BLK + 32, 32].set(b2.reshape(32))        # b2 fold
    slab = slab.at[_ROW_BLK + 32, 32].set(1.0)                            # ones row
    slab = slab.at[_ROW_BLK:_ROW_BLK + 32, _OUT_LANE:_OUT_LANE + 40].set(w3)
    slab = slab.at[_ROW_BLK + 32, _OUT_LANE:_OUT_LANE + 40].set(b3.reshape(40))
    return slab


@jax.jit
def condition_network_forward(x, packed_slab):
    """x: (B, F) float32.  Only x[0, 0] is consumed -- this matches the PyTorch
    module, which applies x[:, 0:1] and then returns row 0 only; the rest of
    the batch never influences the result.  Whole path (scalar extract +
    pallas_call + output slices) is one jitted dispatch."""
    x0 = x[0, 0].astype(jnp.float32).reshape(1)
    row = pl.pallas_call(
        _condition_mlp_kernel,
        out_shape=jax.ShapeDtypeStruct((1, _SLAB_LANES), jnp.float32),
        in_specs=[
            pl.BlockSpec(memory_space=pltpu.MemorySpace.SMEM),   # scalar x[0, 0]
            pl.BlockSpec(memory_space=pltpu.MemorySpace.VMEM),   # packed param slab
        ],
        out_specs=pl.BlockSpec(memory_space=pltpu.MemorySpace.VMEM),
    )(x0, packed_slab)
    # Only lanes 64:104 of the raw row are meaningful (other lanes hold
    # softplus of padding/garbage) -- never consume the row unsliced.
    return (row[0, _OUT_LANE:_OUT_LANE + 20],
            row[0, _OUT_LANE + 20:_OUT_LANE + 40])


def init_params(key):
    """Deterministic synthetic parameters with the shapes implied by __init__."""
    ks = jax.random.split(key, 6)

    def lin(kw, kb, fan_in, fan_out):
        bound = 1.0 / jnp.sqrt(jnp.float32(fan_in))
        w = jax.random.uniform(kw, (fan_in, fan_out), jnp.float32, -bound, bound)
        b = jax.random.uniform(kb, (1, fan_out), jnp.float32, -bound, bound)
        return w, b

    w1, b1 = lin(ks[0], ks[1], 1, 32)
    w2, b2 = lin(ks[2], ks[3], 32, 32)
    w3, b3 = lin(ks[4], ks[5], 32, 40)
    return (w1, b1, w2, b2, w3, b3)


def _reference_forward(x, params):
    """Pure-JAX reference for the correctness check."""
    w1, b1, w2, b2, w3, b3 = params
    h = x[:, 0:1]
    h = jax.nn.relu(h @ w1 + b1)
    h = jax.nn.relu(h @ w2 + b2)
    h = jax.nn.softplus(h @ w3 + b3)
    return h[0, 0:20], h[0, 20:40]


if __name__ == "__main__":
    key = jax.random.PRNGKey(0)
    k_param, k_x = jax.random.split(key)

    params = init_params(k_param)
    slab = pack_params(params)                       # packed once, reused every call

    # Small batch, a few features; only x[0, 0] is consumed (see docstring).
    x = jax.random.uniform(k_x, (2, 4), jnp.float32, 0.0, 1.0)

    out_a, out_b = condition_network_forward(x, slab)
    jax.block_until_ready((out_a, out_b))

    ref_a, ref_b = _reference_forward(x, params)
    assert out_a.shape == (20,) and out_b.shape == (20,)
    assert jnp.allclose(out_a, ref_a, atol=1e-5, rtol=1e-5)
    assert jnp.allclose(out_b, ref_b, atol=1e-5, rtol=1e-5)

    print("KERNEL_OK")
</pallas_src>

<mosaic_0001>
module attributes {stable_mosaic.version = 11 : i64} {
  func.func @_condition_mlp_kernel(%arg0: memref<1xf32, #tpu.memory_space<smem>>, %arg1: memref<48x128xf32, #tpu.memory_space<vmem>>, %arg2: memref<1x128xf32, #tpu.memory_space<vmem>>) attributes {dimension_semantics = [], scalar_prefetch = 0 : i64, scratch_operands = 0 : i64, tpu.core_type = #tpu.core_type<tc>} {
    %c0 = arith.constant 0 : index
    %0 = memref.load %arg0[%c0] : memref<1xf32, #tpu.memory_space<smem>>
    %c0_0 = arith.constant 0 : index
    %c0_1 = arith.constant 0 : index
    %1 = vector.load %arg1[%c0_0, %c0_1] : memref<48x128xf32, #tpu.memory_space<vmem>>, vector<1x128xf32>
    %c1 = arith.constant 1 : index
    %c0_2 = arith.constant 0 : index
    %2 = vector.load %arg1[%c1, %c0_2] : memref<48x128xf32, #tpu.memory_space<vmem>>, vector<1x128xf32>
    %c8 = arith.constant 8 : index
    %c0_3 = arith.constant 0 : index
    %3 = vector.load %arg1[%c8, %c0_3] : memref<48x128xf32, #tpu.memory_space<vmem>>, vector<40x128xf32>
    %4 = vector.broadcast %0 : f32 to vector<1x128xf32>
    %5 = arith.mulf %4, %1 : vector<1x128xf32>
    %6 = arith.addf %5, %2 : vector<1x128xf32>
    %cst = arith.constant 0.000000e+00 : f32
    %7 = vector.broadcast %cst : f32 to vector<1x128xf32>
    %8 = arith.maximumf %6, %7 : vector<1x128xf32>
    %9 = vector.broadcast %8 : vector<1x128xf32> to vector<40x128xf32>
    %10 = arith.mulf %9, %3 : vector<40x128xf32>
    %cst_4 = arith.constant dense<0.000000e+00> : vector<40xf32>
    %11 = vector.multi_reduction <add>, %10, %cst_4 [1] : vector<40x128xf32> to vector<40xf32>
    %12 = vector.shape_cast %11 : vector<40xf32> to vector<40x1xf32>
    %cst_5 = arith.constant 0.000000e+00 : f32
    %13 = vector.broadcast %cst_5 : f32 to vector<40x1xf32>
    %14 = arith.maximumf %12, %13 : vector<40x1xf32>
    %15 = vector.broadcast %14 : vector<40x1xf32> to vector<40x128xf32>
    %16 = arith.mulf %15, %3 : vector<40x128xf32>
    %cst_6 = arith.constant dense<0.000000e+00> : vector<128xf32>
    %17 = vector.multi_reduction <add>, %16, %cst_6 [0] : vector<40x128xf32> to vector<128xf32>
    %18 = vector.shape_cast %17 : vector<128xf32> to vector<1x128xf32>
    %cst_7 = arith.constant 0.000000e+00 : f32
    %19 = vector.broadcast %cst_7 : f32 to vector<1x128xf32>
    %20 = arith.maximumf %18, %19 : vector<1x128xf32>
    %21 = math.absf %18 : vector<1x128xf32>
    %cst_8 = arith.constant 0.000000e+00 : f32
    %22 = vector.broadcast %cst_8 : f32 to vector<1x128xf32>
    %23 = arith.subf %22, %21 : vector<1x128xf32>
    %24 = math.exp %23 : vector<1x128xf32>
    %25 = math.log1p %24 : vector<1x128xf32>
    %26 = arith.addf %20, %25 : vector<1x128xf32>
    %c0_9 = arith.constant 0 : index
    %c0_10 = arith.constant 0 : index
    %27 = vector.load %arg2[%c0_9, %c0_10] : memref<1x128xf32, #tpu.memory_space<vmem>>, vector<1x128xf32>
    tpu.vector_store %arg2[%c0_9, %c0_10], %26 {strides = array<i32>} : memref<1x128xf32, #tpu.memory_space<vmem>>, vector<1x128xf32>,
    return
  }
}

</mosaic_0001>

<bundles_post_ra>
// kernel: condition_network_forward.1
= control target key start
LH: loop header
LB: loop body
LE: loop exit
PB: predicated region body
PF: predicated region fallthrough
CT: control target
= control target key end

     0   :  { %8 = vsyncpa [#allocation4], 0  ;;  %s127_s9 = smov [#allocation3]   ;;  %s154_s0 = inlined_call_operand.<no memory space> [shape: f32[1], index: 0, kind: input, shape index: {}]   ;;  %s155_s1 = inlined_call_operand.hbm [shape: f32[48,128], index: 1, kind: input, shape index: {}]   ;;  %s156_s2 = inlined_call_operand.vmem [shape: f32[1,128], index: 2, kind: output, shape index: {}]  }
   0x1   :  { %s16_s10 = sshll.u32 %s127_s9, 4  ;;  %s17_s10 = int_to_ptr.vmem [resolvable:$true] %s16_s10 }
   0x2   :  { %s113_s11 = scalar_lea.vmem %s17_s10, 768  ;;  %p118_p1 = scmp.lt.s32.totalorder %s17_s10, %s17_s10 }
   0x3   :  { %p114_p0 = scmp.ne.s32.totalorder %s17_s10, %s113_s11  ;;  %p119_p2 = scmp.lt.s32.totalorder %s113_s11, %s113_s11 }
   0x5   :  { %p120_p3 = por %p119_p2, %p118_p1 }
   0x7   :  { %p121_p4 = pnand %p120_p3, %p114_p0 }
   0x9   :  { %124 = shalt.err (!%p121_p4)
}
   0xa   :  { %s128_s12 = smov 128   ;;  %s129_s13 = smov 8  }
   0xb   :  { %22 = dma.hbm_to_vmem [thread:$0]  %s155_s1, 768, %s17_s10, [#allocation4], %s128_s12, %s128_s12, %s129_s13  }
   0xc   :  { %125 = dma.done.wait [#allocation4], 768  }
   0xd   :  { %126 = vsyncadd [#allocation4], 4294966528  ;;  %v38_v0 = vlaneseq  ;;  %v34_v1 = vstv %s154_s0  ;;  %v27_v3 = vld [vmem:[#allocation3] sm:$0x1]  ;;  %v28_v4 = vld [vmem:[#allocation3 + $0x1] sm:$0x1] }
   0xe   :  { %v35_v5 = vmul.f32 %v34_v1, %v27_v3  ;;  %v29_v9 = vld [vmem:[#allocation3 + $0x8] sm:$0xff]  ;;  %v31_v10 = vld [vmem:[#allocation3 + $0x18] sm:$0xff]  ;;  %v30_v12 = vld [vmem:[#allocation3 + $0x10] sm:$0xff] }
   0xf   :  { %v39_v2 = vshrl.u32 %v38_v0, 7  ;;  %v32_v13 = vld [vmem:[#allocation3 + $0x20] sm:$0xff]  ;;  %v33_v18 = vld [vmem:[#allocation3 + $0x28] sm:$0xff] }
  0x10   :  { %v36_v6 = vadd.f32 %v35_v5, %v28_v4 }
  0x11   :  { %v40_v7 = vsub.s32 0, %v39_v2 }
  0x12   :  { %v37_v8 = vmax.f32 %v36_v6, 0.0 }
  0x14   :  { %v41_v11 = vrot.slane %v37_v8, %v40_v7 }
  0x16   :  { %v42_v14 = vmul.f32 %v41_v11, %v29_v9  ;;  %v44_v15 = vmul.f32 %v41_v11, %v31_v10  ;;  %v43_v16 = vmul.f32 %v41_v11, %v30_v12  ;;  %v45_v17 = vmul.f32 %v41_v11, %v32_v13 }
  0x17   :  { %v46_v19 = vmul.f32 %v41_v11, %v33_v18 }
  0x18   :  { %47 = vadd.xlane.f32.xlu0 %v42_v14  ;;  %51 = vadd.xlane.f32.xlu1 %v44_v15 }
  0x1c   :  { %49 = vadd.xlane.f32.xlu0 %v43_v16  ;;  %53 = vadd.xlane.f32.xlu1 %v45_v17 }
  0x20   :  { %55 = vadd.xlane.f32.xlu0 %v46_v19 }
  0xa1   :  { %v48_v20 = vpop.xlane.xlu0 %47  ;;  %v52_v21 = vpop.xlane.xlu1 %51 }
  0xa2   :  { %v57_v22 = vmax.f32 %v48_v20, 0.0  ;;  %v59_v25 = vmax.f32 %v52_v21, 0.0 }
  0xa4   :  { %v62_v28 = vmul.f32 %v57_v22, %v29_v9  ;;  %v64_v31 = vmul.f32 %v59_v25, %v31_v10 }
  0xa5   :  { %v50_v23 = vpop.xlane.xlu0 %49  ;;  %v54_v24 = vpop.xlane.xlu1 %53 }
  0xa6   :  { %v58_v26 = vmax.f32 %v50_v23, 0.0  ;;  %v60_v27 = vmax.f32 %v54_v24, 0.0 }
  0xa8   :  { %v63_v29 = vmul.f32 %v58_v26, %v30_v12  ;;  %v65_v33 = vmul.f32 %v60_v27, %v32_v13 }
  0xa9   :  { %v56_v30 = vpop.xlane.xlu0 %55 }
  0xaa   :  { %v67_v32 = vadd.f32 %v63_v29, %v62_v28  ;;  %v61_v34 = vmax.f32 %v56_v30, 0.0 }
  0xac   :  { %v68_v35 = vadd.f32 %v67_v32, %v64_v31  ;;  %v66_v36 = vmul.f32 %v61_v34, %v33_v18 }
  0xae   :  { %v69_v37 = vadd.f32 %v68_v35, %v65_v33 }
  0xb0   :  { %v70_v38 = vadd.f32 %v69_v37, %v66_v36 }
  0xb2   :  { %v71_v39 = vrot.slane %v70_v38, 4 }
  0xb4   :  { %v72_v40 = vadd.f32 %v71_v39, %v70_v38 }
  0xb6   :  { %v73_v41 = vrot.slane %v72_v40, 2 }
  0xb8   :  { %v74_v42 = vadd.f32 %v73_v41, %v72_v40 }
  0xba   :  { %v75_v43 = vrot.slane %v74_v42, 1 }
  0xbc   :  { %v76_v44 = vadd.f32 %v75_v43, %v74_v42 }
  0xbe   :  { %v78_v45 = vand.u32 2147483647, %v76_v44  ;;  %v77_v56 = vmax.f32 %v76_v44, 0.0 }
  0xc0   :  { %v79_v46 = vsub.f32 0.0, %v78_v45 }
  0xc2   :  { %v80_v47 = vmul.f32 1.442695, %v79_v46 }
  0xc4   :  { %101 = vpow2.f32 %v80_v47 }
  0xd1   :  { %v102_v48 = vpop.eup %101 }
  0xd2   :  { %v82_v49 = vadd.f32 1.0, %v102_v48  ;;  %v85_v50 = vmul.f32 -0.5, %v102_v48  ;;  %v88_v52 = vand.u32 2147483647, %v102_v48 }
  0xd4   :  { %103 = vlog2.f32 %v82_v49  ;;  %v86_v51 = vadd.f32 1.0, %v85_v50  ;;  %vm89_vm0 = vcmp.lt.f32.partialorder %v88_v52, 0.0004427343 }
  0xd6   :  { %v87_v55 = vmul.f32 %v102_v48, %v86_v51 }
  0xe1   :  { %v104_v53 = vpop.eup %103 }
  0xe2   :  { %v84_v54 = vmul.f32 0.6931472, %v104_v53 }
  0xe4   :  { %v90_v57 = vsel %vm89_vm0, %v87_v55, %v84_v54 }
  0xe5   :  { %v91_v58 = vadd.f32 %v90_v57, %v77_v56 }
  0xe7   :  { %92 = vst [vmem:[%s156_s2] sm:$0x1] %v91_v58 }
  0xe8   :  { %97 = vsyncpa [#allocation4], 1 }

</bundles_post_ra>
